<compile_context>
chip_gen: v7x
topology: tpu7x:2x2x1
jax: 0.10.0
libtpu: 0.0.40
codegen_flags: <defaults>
</compile_context>

<pallas_src>
import functools

import jax
import jax.numpy as jnp
from jax.experimental import pallas as pl
from jax.experimental.pallas import tpu as pltpu


# ----------------------------------------------------------------------------
# Pallas kernels: matmul + fused epilogues
# ----------------------------------------------------------------------------
def _mm_kernel(p_ref, w_ref, b_ref, o_ref, *, relu_cols):
    """o = relu(p @ w + b); if relu_cols is an int, ReLU only the first relu_cols
    output columns (used for the fused conv_1|conv_3 matmul)."""
    acc = jnp.dot(p_ref[...], w_ref[...], preferred_element_type=jnp.float32)
    acc = acc + b_ref[...]
    if relu_cols is None:
        acc = jnp.maximum(acc, 0.0)
    else:
        col = jax.lax.broadcasted_iota(jnp.int32, acc.shape, 1)
        acc = jnp.where(col < relu_cols, jnp.maximum(acc, 0.0), acc)
    o_ref[...] = acc


def _mm_res_kernel(p_ref, w_ref, b_ref, r_ref, o_ref):
    """o = relu(p @ w + b + r)  (conv_2 + bn_2 + residual add + final ReLU)."""
    acc = jnp.dot(p_ref[...], w_ref[...], preferred_element_type=jnp.float32)
    o_ref[...] = jnp.maximum(acc + b_ref[...] + r_ref[...], 0.0)


def _pallas_matmul(p, w, b, *, res=None, relu_cols=None, tm=256):
    """Row-tiled matmul with fused bias / ReLU / residual epilogue.

    p: (R, K) float32, w: (K, N) float32, b: (N,), res: optional (R, N).
    Returns (R, N) float32.
    """
    R, K = p.shape
    N = w.shape[1]
    # Large MXU-friendly row tile, clamped (and kept a multiple of 8 sublanes).
    tm = max(8, min(tm, ((R + 7) // 8) * 8))
    Rp = ((R + tm - 1) // tm) * tm
    if Rp != R:
        p = jnp.pad(p, ((0, Rp - R), (0, 0)))
        if res is not None:
            res = jnp.pad(res, ((0, Rp - R), (0, 0)))
    b = b.reshape(1, N).astype(jnp.float32)

    in_specs = [
        pl.BlockSpec((tm, K), lambda i: (i, 0)),
        pl.BlockSpec((K, N), lambda i: (0, 0)),   # constant weight tile
        pl.BlockSpec((1, N), lambda i: (0, 0)),   # constant bias tile
    ]
    args = [p.astype(jnp.float32), w.astype(jnp.float32), b]
    if res is not None:
        in_specs.append(pl.BlockSpec((tm, N), lambda i: (i, 0)))
        args.append(res.astype(jnp.float32))
        kernel = _mm_res_kernel
    else:
        kernel = functools.partial(_mm_kernel, relu_cols=relu_cols)

    cost = pl.CostEstimate(
        flops=int(2 * Rp * K * N),
        transcendentals=0,
        bytes_accessed=int(4 * (Rp * K + K * N + N
                                + Rp * N * (2 if res is not None else 1))),
    )

    out = pl.pallas_call(
        kernel,
        out_shape=jax.ShapeDtypeStruct((Rp, N), jnp.float32),
        grid_spec=pltpu.PrefetchScalarGridSpec(
            num_scalar_prefetch=0,
            grid=(Rp // tm,),
            in_specs=in_specs,
            out_specs=pl.BlockSpec((tm, N), lambda i: (i, 0)),
        ),
        compiler_params=pltpu.CompilerParams(
            dimension_semantics=("parallel",),
        ),
        cost_estimate=cost,
    )(*args)
    return out[:R]


# ----------------------------------------------------------------------------
# JAX-side glue: BN folding, im2col, forward pass
# ----------------------------------------------------------------------------
def _fold_conv_bn(w, b, gamma, beta, mean, var, eps=1e-5):
    """Fold inference-mode BatchNorm into a conv.

    w: (Cout, Cin, kh, kw) PyTorch layout, b: (Cout,).
    Returns (kh*kw*Cin, Cout) matmul weight matching im2col (dy, dx, ci) order,
    and folded bias (Cout,).
    """
    cout, cin, kh, kw = w.shape
    scale = gamma * jax.lax.rsqrt(var + eps)
    w_f = w * scale[:, None, None, None]
    b_f = (b - mean) * scale + beta
    wm = jnp.transpose(w_f, (2, 3, 1, 0)).reshape(kh * kw * cin, cout)
    return wm.astype(jnp.float32), b_f.astype(jnp.float32)


def _extract_patches(x, *, ksize=3, stride=1, pad=1):
    """x: (B, H, W, C) -> (B, Hout, Wout, ksize*ksize*C) im2col patches."""
    B, H, W, C = x.shape
    xp = jnp.pad(x, ((0, 0), (pad, pad), (pad, pad), (0, 0)))
    Hout = (H + 2 * pad - ksize) // stride + 1
    Wout = (W + 2 * pad - ksize) // stride + 1
    slabs = []
    for dy in range(ksize):
        for dx in range(ksize):
            slabs.append(
                xp[:, dy:dy + stride * (Hout - 1) + 1:stride,
                      dx:dx + stride * (Wout - 1) + 1:stride, :])
    return jnp.concatenate(slabs, axis=-1), Hout, Wout


def res_2d_forward(x, params, *, stride=2, tm=256):
    """Res_2d forward.  x: (B, Cin, H, W) NCHW float32.

    params: {'c1': {...}, 'c2': {...}, optional 'c3': {...}} where each entry has
    keys w, b, gamma, beta, mean, var (PyTorch conv + inference-mode BN).
    Returns (B, Cout, Hout, Wout) NCHW float32.
    """
    B, Cin, H, W = x.shape
    Cout = params["c1"]["w"].shape[0]
    diff = (stride != 1) or (Cin != Cout)

    xh = jnp.transpose(x, (0, 2, 3, 1)).astype(jnp.float32)  # NHWC (channels on lanes)

    w1m, b1 = _fold_conv_bn(**params["c1"])
    w2m, b2 = _fold_conv_bn(**params["c2"])

    # Stage 1 patches are shared by conv_1 and the conv_3 shortcut (same stride/pad).
    p1, Hout, Wout = _extract_patches(xh, stride=stride)
    R = B * Hout * Wout
    p1 = p1.reshape(R, -1)

    if diff:
        w3m, b3 = _fold_conv_bn(**params["c3"])
        wcat = jnp.concatenate([w1m, w3m], axis=1)            # (9*Cin, 2*Cout)
        bcat = jnp.concatenate([b1, b3], axis=0)               # (2*Cout,)
        full = _pallas_matmul(p1, wcat, bcat, relu_cols=Cout, tm=tm)
        y1, sc = full[:, :Cout], full[:, Cout:]                # relu'd main / raw shortcut
    else:
        y1 = _pallas_matmul(p1, w1m, b1, relu_cols=None, tm=tm)
        sc = xh.reshape(R, Cout)                               # identity shortcut

    # Stage 2: conv_2 (stride 1) + bn_2 + residual add + final ReLU.
    p2, _, _ = _extract_patches(y1.reshape(B, Hout, Wout, Cout), stride=1)
    p2 = p2.reshape(R, -1)
    out = _pallas_matmul(p2, w2m, b2, res=sc, tm=tm)

    out = out.reshape(B, Hout, Wout, Cout)
    return jnp.transpose(out, (0, 3, 1, 2))                    # back to NCHW


# ----------------------------------------------------------------------------
# Pure-JAX reference (module semantics, inference-mode BN)
# ----------------------------------------------------------------------------
def _ref_forward(x, params, *, stride=2, eps=1e-5):
    def conv(h, p, s):
        y = jax.lax.conv_general_dilated(
            h, p["w"], window_strides=(s, s), padding=((1, 1), (1, 1)),
            dimension_numbers=("NCHW", "OIHW", "NCHW"),
            precision=jax.lax.Precision.HIGHEST)
        return y + p["b"][None, :, None, None]

    def bn(y, p):
        s = (p["gamma"] * jax.lax.rsqrt(p["var"] + eps))[None, :, None, None]
        return (y - p["mean"][None, :, None, None]) * s + p["beta"][None, :, None, None]

    Cout = params["c1"]["w"].shape[0]
    h = jax.nn.relu(bn(conv(x, params["c1"], stride), params["c1"]))
    h = bn(conv(h, params["c2"], 1), params["c2"])
    if stride != 1 or x.shape[1] != Cout:
        sc = bn(conv(x, params["c3"], stride), params["c3"])
    else:
        sc = x
    return jax.nn.relu(sc + h)


def _make_conv_bn_params(key, cin, cout):
    ks = jax.random.split(key, 6)
    return dict(
        w=jax.random.normal(ks[0], (cout, cin, 3, 3), jnp.float32) * 0.1,
        b=jax.random.normal(ks[1], (cout,), jnp.float32) * 0.1,
        gamma=jax.random.uniform(ks[2], (cout,), jnp.float32, 0.5, 1.5),
        beta=jax.random.normal(ks[3], (cout,), jnp.float32) * 0.1,
        mean=jax.random.normal(ks[4], (cout,), jnp.float32) * 0.1,
        var=jax.random.uniform(ks[5], (cout,), jnp.float32, 0.5, 1.5),
    )


# ----------------------------------------------------------------------------
if __name__ == "__main__":
    key = jax.random.PRNGKey(0)
    kx, k1, k2, k3, kx2, k4, k5 = jax.random.split(key, 7)

    # Case 1: Res_2d(input_channels=4, output_channels=8, shape=3, stride=2)
    #         -> projection shortcut (diff=True), the module's default config.
    B, Cin, Cout, H, W, stride = 2, 4, 8, 16, 16, 2
    x = jax.random.normal(kx, (B, Cin, H, W), jnp.float32)
    params = dict(c1=_make_conv_bn_params(k1, Cin, Cout),
                  c2=_make_conv_bn_params(k2, Cout, Cout),
                  c3=_make_conv_bn_params(k3, Cin, Cout))
    out = jax.block_until_ready(res_2d_forward(x, params, stride=stride))
    ref = _ref_forward(x, params, stride=stride)
    assert out.shape == (B, Cout, H // stride, W // stride), out.shape
    assert out.dtype == jnp.float32
    assert bool(jnp.all(jnp.isfinite(out)))
    assert bool(jnp.allclose(out, ref, atol=3e-2, rtol=3e-2)), \
        float(jnp.max(jnp.abs(out - ref)))

    # Case 2: identity shortcut (stride=1, Cin == Cout, diff=False).
    x2 = jax.random.normal(kx2, (B, Cout, H, W), jnp.float32)
    params2 = dict(c1=_make_conv_bn_params(k4, Cout, Cout),
                   c2=_make_conv_bn_params(k5, Cout, Cout))
    out2 = jax.block_until_ready(res_2d_forward(x2, params2, stride=1))
    ref2 = _ref_forward(x2, params2, stride=1)
    assert out2.shape == (B, Cout, H, W), out2.shape
    assert bool(jnp.all(jnp.isfinite(out2)))
    assert bool(jnp.allclose(out2, ref2, atol=3e-2, rtol=3e-2)), \
        float(jnp.max(jnp.abs(out2 - ref2)))

    print("KERNEL_OK")
</pallas_src>

<mosaic_0001>
module attributes {stable_mosaic.version = 11 : i64} {
  func.func @_mm_kernel(%arg0: i32, %arg1: memref<128x36xf32, #tpu.memory_space<vmem>>, %arg2: memref<36x16xf32, #tpu.memory_space<vmem>>, %arg3: memref<1x16xf32, #tpu.memory_space<vmem>>, %arg4: memref<128x16xf32, #tpu.memory_space<vmem>>) attributes {dimension_semantics = [#tpu.dimension_semantics<parallel>], iteration_bounds = array<i64: 1>, scalar_prefetch = 0 : i64, scratch_operands = 0 : i64, tpu.core_type = #tpu.core_type<tc>, window_params = [{transform_indices = @transform_0, window_bounds = array<i64: 128, 36>}, {pipeline_mode = #tpu.pipeline_mode<synchronous>, transform_indices = @transform_1, window_bounds = array<i64: 36, 16>}, {pipeline_mode = #tpu.pipeline_mode<synchronous>, transform_indices = @transform_2, window_bounds = array<i64: 1, 16>}, {transform_indices = @transform_3, window_bounds = array<i64: 128, 16>}]} {
    %c0 = arith.constant 0 : index
    %c0_0 = arith.constant 0 : index
    %0 = vector.load %arg1[%c0, %c0_0] : memref<128x36xf32, #tpu.memory_space<vmem>>, vector<128x36xf32>
    %c0_1 = arith.constant 0 : index
    %c0_2 = arith.constant 0 : index
    %1 = vector.load %arg2[%c0_1, %c0_2] : memref<36x16xf32, #tpu.memory_space<vmem>>, vector<36x16xf32>
    %cst = arith.constant dense<0.000000e+00> : vector<128x16xf32>
    %2 = tpu.matmul %0, %1, %cst {dimension_numbers = #tpu.dot_dimension_numbers<[1], [0], [0], [1], [0, 0, 1, 1], [], []>} : vector<128x36xf32>, vector<36x16xf32>, vector<128x16xf32> -> vector<128x16xf32>
    %c0_3 = arith.constant 0 : index
    %c0_4 = arith.constant 0 : index
    %3 = vector.load %arg3[%c0_3, %c0_4] : memref<1x16xf32, #tpu.memory_space<vmem>>, vector<1x16xf32>
    %4 = vector.broadcast %3 : vector<1x16xf32> to vector<128x16xf32>
    %5 = arith.addf %2, %4 : vector<128x16xf32>
    %6 = tpu.iota {dimensions = array<i32: 1>} : vector<128x16xi32>
    %c8_i32 = arith.constant 8 : i32
    %7 = vector.broadcast %c8_i32 : i32 to vector<128x16xi32>
    %8 = arith.cmpi slt, %6, %7 : vector<128x16xi32>
    %cst_5 = arith.constant 0.000000e+00 : f32
    %9 = vector.broadcast %cst_5 : f32 to vector<128x16xf32>
    %10 = arith.maximumf %5, %9 : vector<128x16xf32>
    %11 = arith.select %8, %10, %5 : vector<128x16xi1>, vector<128x16xf32>
    %c0_6 = arith.constant 0 : index
    %c0_7 = arith.constant 0 : index
    %12 = vector.load %arg4[%c0_6, %c0_7] : memref<128x16xf32, #tpu.memory_space<vmem>>, vector<128x16xf32>
    tpu.vector_store %arg4[%c0_6, %c0_7], %11 {strides = array<i32>} : memref<128x16xf32, #tpu.memory_space<vmem>>, vector<128x16xf32>,
    return
  }
  func.func @transform_0(%arg0: i32) -> (i32, i32) {
    %c0_i32 = arith.constant 0 : i32
    %c0_i32_0 = arith.constant 0 : i32
    return %arg0, %c0_i32 : i32, i32
  }
  func.func @transform_1(%arg0: i32) -> (i32, i32) {
    %c0_i32 = arith.constant 0 : i32
    %c0_i32_0 = arith.constant 0 : i32
    %c0_i32_1 = arith.constant 0 : i32
    return %c0_i32, %c0_i32_0 : i32, i32
  }
  func.func @transform_2(%arg0: i32) -> (i32, i32) {
    %c0_i32 = arith.constant 0 : i32
    %c0_i32_0 = arith.constant 0 : i32
    %c0_i32_1 = arith.constant 0 : i32
    return %c0_i32, %c0_i32_0 : i32, i32
  }
  func.func @transform_3(%arg0: i32) -> (i32, i32) {
    %c0_i32 = arith.constant 0 : i32
    %c0_i32_0 = arith.constant 0 : i32
    return %arg0, %c0_i32 : i32, i32
  }
}

</mosaic_0001>

<bundles_post_ra>
// kernel: tpu_custom_call.1
= control target key start
LH: loop header
LB: loop body
LE: loop exit
PB: predicated region body
PF: predicated region fallthrough
CT: control target
= control target key end

     0   :  { %vm42_vm0 = vcmask 293888   ;;  %vm91_vm1 = vcmask 1043456   ;;  %v240_v23 = vlaneseq  ;;  %vm275_vm3 = vcmask 130048   ;;  %s602_s1 = inlined_call_operand.vmem [shape: f32[36,16], index: 1, kind: input, shape index: {}]   ;;  %s603_s0 = inlined_call_operand.vmem [shape: f32[128,36], index: 0, kind: input, shape index: {}]   ;;  %s604_s2 = inlined_call_operand.vmem [shape: f32[1,16], index: 2, kind: input, shape index: {}]   ;;  %s605_s3 = inlined_call_operand.vmem [shape: f32[128,16], index: 3, kind: output, shape index: {}]  }
   0x1   :  { %v30_v0 = vld [vmem:[%s602_s1] sm:$0xff]  ;;  %v31_v1 = vld [vmem:[%s602_s1 + $0x8] sm:$0xff]  ;;  %v32_v2 = vld [vmem:[%s602_s1 + $0x10] sm:$0xff] }
   0x2   :  { %v369_v3 = vpack.c.bf16 %v31_v1, %v30_v0  ;;  %v33_v4 = vld [vmem:[%s602_s1 + $0x18] sm:$0xff]  ;;  %v14_v5 = vld [vmem:[%s603_s0] sm:$0xff]  ;;  %v15_v9 = vld [vmem:[%s603_s0 + $0x8] sm:$0xff]  ;;  %v487_v25 = vand.u32 127, %v240_v23 }
   0x3   :  { %v373_v6 = vpack.c.bf16 %v33_v4, %v32_v2  ;;  %345 = vmatprep.mubr.msk.f32.mxu0 %vm42_vm0, %v14_v5  ;;  %v22_v7 = vld [vmem:[%s603_s0 + $0x40] sm:$0xff]  ;;  %v23_v10 = vld [vmem:[%s603_s0 + $0x48] sm:$0xff]  ;;  %v16_v11 = vld [vmem:[%s603_s0 + $0x10] sm:$0xff] }
   0x4   :  { %370 = vmatprep.subr.bf16.mxu0 %v369_v3  ;;  %377 = vmatprep.subr.bf16.mxu1 %v369_v3  ;;  %v34_v8 = vld [vmem:[%s602_s1 + $0x20] sm:$0xf]  ;;  %v24_v12 = vld [vmem:[%s603_s0 + $0x50] sm:$0xff]  ;;  %v17_v13 = vld [vmem:[%s603_s0 + $0x18] sm:$0xff]  ;;  %vm242_vm2 = vcmp.lt.s32.totalorder %v487_v25, 8 }
   0x5   :  { %372 = vmatpush3.bf16.msra.mxu0 %v369_v3  ;;  %380 = vmatpush3.bf16.msra.mxu1 %v369_v3  ;;  %v25_v14 = vld [vmem:[%s603_s0 + $0x58] sm:$0xff]  ;;  %v18_v15 = vld [vmem:[%s603_s0 + $0x20] sm:$0xff]  ;;  %v19_v17 = vld [vmem:[%s603_s0 + $0x28] sm:$0xff] }
   0x6   :  { %374 = vmatprep.subr.bf16.mxu0 %v373_v6  ;;  %378 = vmatprep.subr.bf16.mxu1 %v373_v6  ;;  %v26_v16 = vld [vmem:[%s603_s0 + $0x60] sm:$0xff]  ;;  %v27_v18 = vld [vmem:[%s603_s0 + $0x68] sm:$0xff]  ;;  %v20_v19 = vld [vmem:[%s603_s0 + $0x30] sm:$0xff] }
   0x7   :  { %357 = vmatprep.mubr.msk.f32.mxu1 %vm42_vm0, %v22_v7  ;;  %v28_v20 = vld [vmem:[%s603_s0 + $0x70] sm:$0xff]  ;;  %v21_v21 = vld [vmem:[%s603_s0 + $0x38] sm:$0xff]  ;;  %v485_v24 = vld [vmem:[%s604_s2] ss:$0 sm:$0xff] }
   0x8   :  { %v29_v22 = vld [vmem:[%s603_s0 + $0x78] sm:$0xff] }
   0x9   :  { %376 = vmatpush3.bf16.msra.mxu0 %v373_v6  ;;  %381 = vmatpush3.bf16.msra.mxu1 %v373_v6 }
   0xa   :  { %343 = vmatprep.subr.msk.mxu0 %vm91_vm1, %v34_v8  ;;  %379 = vmatprep.subr.msk.mxu1 %vm91_vm1, %v34_v8 }
   0xd   :  { %344 = vmatpush3.msk.msra.mxu0 %vm91_vm1, %v34_v8  ;;  %382 = vmatpush3.msk.msra.mxu1 %vm91_vm1, %v34_v8 }
   0xe   :  { %346 = vmatmul.mubr.msk.f32.vlgmr.msra.gmra.mrb[0].mxu0 %vm42_vm0, %v15_v9  ;;  %358 = vmatmul.mubr.msk.f32.vlgmr.msra.gmra.mrb[0].mxu1 %vm42_vm0, %v23_v10 }
   0xf   :  { %348 = vmatprep.mubr.msk.f32.mxu0 %vm42_vm0, %v16_v11  ;;  %360 = vmatprep.mubr.msk.f32.mxu1 %vm42_vm0, %v24_v12 }
  0x12   :  { %349 = vmatmul.mubr.msk.f32.gmra.mrb[2].mxu0 %vm42_vm0, %v17_v13  ;;  %361 = vmatmul.mubr.msk.f32.gmra.mrb[2].mxu1 %vm42_vm0, %v25_v14 }
  0x13   :  { %351 = vmatprep.mubr.msk.f32.mxu0 %vm42_vm0, %v18_v15  ;;  %363 = vmatprep.mubr.msk.f32.mxu1 %vm42_vm0, %v26_v16 }
  0x16   :  { %352 = vmatmul.mubr.msk.f32.gmra.mrb[4].mxu0 %vm42_vm0, %v19_v17  ;;  %364 = vmatmul.mubr.msk.f32.gmra.mrb[4].mxu1 %vm42_vm0, %v27_v18 }
  0x17   :  { %354 = vmatprep.mubr.msk.f32.mxu0 %vm42_vm0, %v20_v19  ;;  %366 = vmatprep.mubr.msk.f32.mxu1 %vm42_vm0, %v28_v20 }
  0x1a   :  { %355 = vmatmul.mubr.msk.f32.gmra.mrb[6].mxu0 %vm42_vm0, %v21_v21  ;;  %367 = vmatmul.mubr.msk.f32.gmra.mrb[6].mxu1 %vm42_vm0, %v29_v22 }
  0xe1   :  { %v347_v26 = vpop.f32.mrb[0].mxu0  ;;  %v359_v27 = vpop.f32.mrb[0].mxu1 }
  0xe2   :  { %v167_v28 = vadd.f32 %v347_v26, %v485_v24  ;;  %v207_v29 = vadd.f32 %v359_v27, %v485_v24  ;;  %v161_v30 = vpop.f32.mrb[1].mxu0  ;;  %v201_v31 = vpop.f32.mrb[1].mxu1 }
  0xe3   :  { %v162_v32 = vadd.f32 %v485_v24, %v161_v30  ;;  %v202_v33 = vadd.f32 %v485_v24, %v201_v31 }
  0xe4   :  { %v244_v34 = vmax.f32 %v167_v28, 0.0  ;;  %v252_v35 = vmax.f32 %v207_v29, 0.0 }
  0xe5   :  { %v243_v36 = vmax.f32 %v162_v32, 0.0  ;;  %v251_v37 = vmax.f32 %v202_v33, 0.0  ;;  %v350_v38 = vpop.f32.mrb[2].mxu0  ;;  %v362_v39 = vpop.f32.mrb[2].mxu1 }
  0xe6   :  { %v260_v40 = vsel %vm242_vm2, %v244_v34, %v167_v28  ;;  %v268_v41 = vsel %vm242_vm2, %v252_v35, %v207_v29  ;;  %v177_v42 = vadd.f32 %v350_v38, %v485_v24  ;;  %v217_v43 = vadd.f32 %v362_v39, %v485_v24  ;;  %v171_v44 = vpop.f32.mrb[3].mxu0  ;;  %v211_v45 = vpop.f32.mrb[3].mxu1 }
  0xe7   :  { %277 = vst.msk [vmem:[%s605_s3 + $0x8] sm:$0xff] %vm275_vm3, %v260_v40  ;;  %285 = vst.msk [vmem:[%s605_s3 + $0x48] sm:$0xff] %vm275_vm3, %v268_v41  ;;  %v259_v46 = vsel %vm242_vm2, %v243_v36, %v162_v32  ;;  %v267_v47 = vsel %vm242_vm2, %v251_v37, %v202_v33  ;;  %v172_v48 = vadd.f32 %v485_v24, %v171_v44 }
  0xe8   :  { %v212_v49 = vadd.f32 %v485_v24, %v211_v45  ;;  %276 = vst.msk [vmem:[%s605_s3] sm:$0xff] %vm275_vm3, %v259_v46  ;;  %284 = vst.msk [vmem:[%s605_s3 + $0x40] sm:$0xff] %vm275_vm3, %v267_v47  ;;  %v246_v50 = vmax.f32 %v177_v42, 0.0  ;;  %v254_v51 = vmax.f32 %v217_v43, 0.0 }
  0xe9   :  { %v245_v52 = vmax.f32 %v172_v48, 0.0  ;;  %v353_v54 = vpop.f32.mrb[4].mxu0  ;;  %v365_v55 = vpop.f32.mrb[4].mxu1 }
  0xea   :  { %v253_v53 = vmax.f32 %v212_v49, 0.0  ;;  %v262_v56 = vsel %vm242_vm2, %v246_v50, %v177_v42  ;;  %v270_v57 = vsel %vm242_vm2, %v254_v51, %v217_v43  ;;  %v187_v58 = vadd.f32 %v353_v54, %v485_v24  ;;  %v181_v60 = vpop.f32.mrb[5].mxu0  ;;  %v221_v61 = vpop.f32.mrb[5].mxu1 }
  0xeb   :  { %v227_v59 = vadd.f32 %v365_v55, %v485_v24  ;;  %279 = vst.msk [vmem:[%s605_s3 + $0x18] sm:$0xff] %vm275_vm3, %v262_v56  ;;  %287 = vst.msk [vmem:[%s605_s3 + $0x58] sm:$0xff] %vm275_vm3, %v270_v57  ;;  %v261_v62 = vsel %vm242_vm2, %v245_v52, %v172_v48  ;;  %v182_v0 = vadd.f32 %v485_v24, %v181_v60 }
  0xec   :  { %v269_v63 = vsel %vm242_vm2, %v253_v53, %v212_v49  ;;  %v222_v1 = vadd.f32 %v485_v24, %v221_v61  ;;  %278 = vst.msk [vmem:[%s605_s3 + $0x10] sm:$0xff] %vm275_vm3, %v261_v62  ;;  %v248_v2 = vmax.f32 %v187_v58, 0.0 }
  0xed   :  { %286 = vst.msk [vmem:[%s605_s3 + $0x50] sm:$0xff] %vm275_vm3, %v269_v63  ;;  %v256_v3 = vmax.f32 %v227_v59, 0.0  ;;  %v247_v4 = vmax.f32 %v182_v0, 0.0  ;;  %v356_v6 = vpop.f32.mrb[6].mxu0  ;;  %v368_v7 = vpop.f32.mrb[6].mxu1 }
  0xee   :  { %v255_v5 = vmax.f32 %v222_v1, 0.0  ;;  %v264_v8 = vsel %vm242_vm2, %v248_v2, %v187_v58  ;;  %v197_v10 = vadd.f32 %v356_v6, %v485_v24  ;;  %v237_v11 = vadd.f32 %v368_v7, %v485_v24  ;;  %v191_v12 = vpop.f32.mrb[7].mxu0  ;;  %v231_v13 = vpop.f32.mrb[7].mxu1 }
  0xef   :  { %v272_v9 = vsel %vm242_vm2, %v256_v3, %v227_v59  ;;  %281 = vst.msk [vmem:[%s605_s3 + $0x28] sm:$0xff] %vm275_vm3, %v264_v8  ;;  %v263_v14 = vsel %vm242_vm2, %v247_v4, %v182_v0  ;;  %v192_v16 = vadd.f32 %v485_v24, %v191_v12  ;;  %v232_v17 = vadd.f32 %v485_v24, %v231_v13 }
  0xf0   :  { %289 = vst.msk [vmem:[%s605_s3 + $0x68] sm:$0xff] %vm275_vm3, %v272_v9  ;;  %v271_v15 = vsel %vm242_vm2, %v255_v5, %v222_v1  ;;  %280 = vst.msk [vmem:[%s605_s3 + $0x20] sm:$0xff] %vm275_vm3, %v263_v14  ;;  %v250_v18 = vmax.f32 %v197_v10, 0.0  ;;  %v258_v19 = vmax.f32 %v237_v11, 0.0 }
  0xf1   :  { %288 = vst.msk [vmem:[%s605_s3 + $0x60] sm:$0xff] %vm275_vm3, %v271_v15  ;;  %v249_v20 = vmax.f32 %v192_v16, 0.0  ;;  %v257_v21 = vmax.f32 %v232_v17, 0.0 }
  0xf2   :  { %v266_v22 = vsel %vm242_vm2, %v250_v18, %v197_v10  ;;  %v274_v23 = vsel %vm242_vm2, %v258_v19, %v237_v11 }
  0xf3   :  { %283 = vst.msk [vmem:[%s605_s3 + $0x38] sm:$0xff] %vm275_vm3, %v266_v22  ;;  %291 = vst.msk [vmem:[%s605_s3 + $0x78] sm:$0xff] %vm275_vm3, %v274_v23  ;;  %v265_v24 = vsel %vm242_vm2, %v249_v20, %v192_v16  ;;  %v273_v26 = vsel %vm242_vm2, %v257_v21, %v232_v17 }
  0xf4   :  { %282 = vst.msk [vmem:[%s605_s3 + $0x30] sm:$0xff] %vm275_vm3, %v265_v24  ;;  %290 = vst.msk [vmem:[%s605_s3 + $0x70] sm:$0xff] %vm275_vm3, %v273_v26 }

</bundles_post_ra>
